<compile_context>
chip_gen: v7x
topology: tpu7x:2x2x1
jax: 0.10.0
libtpu: 0.0.40
codegen_flags: <defaults>
</compile_context>

<pallas_src>
import jax
import jax.numpy as jnp
from jax.experimental import pallas as pl
from jax.experimental.pallas import tpu as pltpu

D_KEYS = 2                      # len(get_keys()) in the PyTorch module
INV_SQRT_D = 1.0 / (2.0 ** 0.5)  # 1/sqrt(d), d = 2
LANE = 128                      # TPU vreg lane width


def attention_kernel(q_ref, k_ref, v_ref, out_ref, attn_ref):
    # q_ref    : (2, tn)  VMEM  -- transposed, lane-dense query tile
    # k_ref    : (2, 2)   SMEM  -- keys   (scalar reads)
    # v_ref    : (2,)     SMEM  -- values (scalar reads)
    # out_ref  : (1, tn)  VMEM
    # attn_ref : (2, tn)  VMEM
    q0 = q_ref[0:1, :]                    # (1, tn) feature 0 of every row
    q1 = q_ref[1:2, :]                    # (1, tn) feature 1 of every row

    # Scalar pre-computation (scalar path, essentially free).  For a 2-way softmax
    # only the score difference matters: attn0 = sigmoid(s0 - s1), attn1 = 1 - attn0.
    dk0 = (k_ref[0, 0] - k_ref[0, 1]) * INV_SQRT_D
    dk1 = (k_ref[1, 0] - k_ref[1, 1]) * INV_SQRT_D
    v0 = v_ref[0]
    v1 = v_ref[1]

    ds = q0 * dk0 + q1 * dk1              # (1, tn) == s0 - s1   (VPU FMAs, whole vregs)
    a0 = 1.0 / (1.0 + jnp.exp(-ds))       # sigmoid == softmax over the 2 keys (EUP exp)
    a1 = 1.0 - a0

    attn_ref[0:1, :] = a0                 # lane-dense, unmasked stores
    attn_ref[1:2, :] = a1
    out_ref[...] = v1 + a0 * (v0 - v1)    # == a0*v0 + a1*v1


def attention_mechanism_forward(query, keys, values, *, tn=512):
    """query: (N, 2) f32; keys: (2, 2) f32; values: (2, 1) f32 -> (out (N,1), attn (N,2))."""
    N, feat = query.shape
    assert feat == D_KEYS

    # Lane-dense tiling of the batch axis: pad N up to a multiple of 128, pick a tile
    # that is a multiple of 128 and divides the padded extent.  Tiny N -> single block.
    n_pad = ((max(N, LANE) + LANE - 1) // LANE) * LANE
    tile = max(LANE, (min(tn, n_pad) // LANE) * LANE)
    n_pad = ((n_pad + tile - 1) // tile) * tile
    grid = (n_pad // tile,)

    q_t = query.T                                           # (2, N) transposed view
    if n_pad != N:
        q_t = jnp.pad(q_t, ((0, 0), (0, n_pad - N)))        # padded cols -> attn 0.5, sliced off

    out_t, attn_t = pl.pallas_call(
        attention_kernel,
        out_shape=(
            jax.ShapeDtypeStruct((1, n_pad), jnp.float32),
            jax.ShapeDtypeStruct((D_KEYS, n_pad), jnp.float32),
        ),
        grid=grid,
        in_specs=[
            pl.BlockSpec((D_KEYS, tile), lambda i: (0, i)),          # query tile (VMEM)
            pl.BlockSpec(memory_space=pltpu.MemorySpace.SMEM),       # keys   -> SMEM scalars
            pl.BlockSpec(memory_space=pltpu.MemorySpace.SMEM),       # values -> SMEM scalars
        ],
        out_specs=(
            pl.BlockSpec((1, tile), lambda i: (0, i)),
            pl.BlockSpec((D_KEYS, tile), lambda i: (0, i)),
        ),
        compiler_params=pltpu.CompilerParams(dimension_semantics=("parallel",)),
    )(q_t, keys, values.reshape(-1))

    out = out_t[:, :N].T                                    # (N, 1)
    attn = attn_t[:, :N].T                                  # (N, 2)
    return out, attn


def make_params():
    """Deterministic stand-in for the PyTorch __init__ (torch.rand parameters)."""
    key = jax.random.PRNGKey(0)
    k_a, k_b = jax.random.split(key)
    a_key = jax.random.uniform(k_a, (1, 2), dtype=jnp.float32)   # nn.Parameter(torch.rand(1, 2))
    b_key = jax.random.uniform(k_b, (1, 2), dtype=jnp.float32)   # nn.Parameter(torch.rand(1, 2))
    a_value = jnp.array([[1.0]], dtype=jnp.float32)
    b_value = jnp.array([[-1.0]], dtype=jnp.float32)
    keys = jnp.concatenate([a_key, b_key], axis=0).T             # (2, 2) == get_keys()
    values = jnp.concatenate([a_value, b_value], axis=0)         # (2, 1) == get_values()
    return keys, values


def reference_forward(query, keys, values):
    scores = (query @ keys) / jnp.sqrt(jnp.float32(D_KEYS))
    attn = jax.nn.softmax(scores, axis=1)
    return attn @ values, attn


if __name__ == "__main__":
    keys, values = make_params()
    rng = jax.random.PRNGKey(0)

    ok = True
    # (a) tiny batch: single padded 128-lane block (no grid overhead)
    # (b) larger batch: 4 parallel grid steps of 512 lanes (feeds both v7x TensorCores)
    for N in (16, 2048):
        query = jax.random.normal(jax.random.fold_in(rng, N), (N, D_KEYS), dtype=jnp.float32)
        out, attn = attention_mechanism_forward(query, keys, values, tn=512)
        out = jax.block_until_ready(out)
        attn = jax.block_until_ready(attn)

        ref_out, ref_attn = reference_forward(query, keys, values)
        ok &= out.shape == (N, 1) and attn.shape == (N, D_KEYS)
        ok &= bool(jnp.allclose(out, ref_out, atol=1e-5, rtol=1e-5))
        ok &= bool(jnp.allclose(attn, ref_attn, atol=1e-5, rtol=1e-5))

    assert ok
    print("KERNEL_OK")
</pallas_src>

<mosaic_0001>
module attributes {stable_mosaic.version = 11 : i64} {
  func.func @attention_kernel(%arg0: i32, %arg1: memref<2x128xf32, #tpu.memory_space<vmem>>, %arg2: memref<2x2xf32, #tpu.memory_space<smem>>, %arg3: memref<2xf32, #tpu.memory_space<smem>>, %arg4: memref<1x128xf32, #tpu.memory_space<vmem>>, %arg5: memref<2x128xf32, #tpu.memory_space<vmem>>) attributes {dimension_semantics = [#tpu.dimension_semantics<parallel>], iteration_bounds = array<i64: 1>, scalar_prefetch = 0 : i64, scratch_operands = 0 : i64, tpu.core_type = #tpu.core_type<tc>, window_params = [{transform_indices = @transform_0, window_bounds = array<i64: 2, 128>}, {transform_indices = @transform_1, window_bounds = array<i64: 2, 2>}, {transform_indices = @transform_2, window_bounds = array<i64: 2>}, {transform_indices = @transform_3, window_bounds = array<i64: 1, 128>}, {transform_indices = @transform_4, window_bounds = array<i64: 2, 128>}]} {
    %c0 = arith.constant 0 : index
    %c0_0 = arith.constant 0 : index
    %0 = vector.load %arg1[%c0, %c0_0] : memref<2x128xf32, #tpu.memory_space<vmem>>, vector<1x128xf32>
    %c1 = arith.constant 1 : index
    %c0_1 = arith.constant 0 : index
    %1 = vector.load %arg1[%c1, %c0_1] : memref<2x128xf32, #tpu.memory_space<vmem>>, vector<1x128xf32>
    %c0_2 = arith.constant 0 : index
    %c0_3 = arith.constant 0 : index
    %2 = memref.load %arg2[%c0_2, %c0_3] : memref<2x2xf32, #tpu.memory_space<smem>>
    %c0_4 = arith.constant 0 : index
    %c1_5 = arith.constant 1 : index
    %3 = memref.load %arg2[%c0_4, %c1_5] : memref<2x2xf32, #tpu.memory_space<smem>>
    %4 = arith.subf %2, %3 : f32
    %cst = arith.constant 0.707106769 : f32
    %5 = arith.mulf %4, %cst : f32
    %c1_6 = arith.constant 1 : index
    %c0_7 = arith.constant 0 : index
    %6 = memref.load %arg2[%c1_6, %c0_7] : memref<2x2xf32, #tpu.memory_space<smem>>
    %c1_8 = arith.constant 1 : index
    %c1_9 = arith.constant 1 : index
    %7 = memref.load %arg2[%c1_8, %c1_9] : memref<2x2xf32, #tpu.memory_space<smem>>
    %8 = arith.subf %6, %7 : f32
    %cst_10 = arith.constant 0.707106769 : f32
    %9 = arith.mulf %8, %cst_10 : f32
    %c0_11 = arith.constant 0 : index
    %10 = memref.load %arg3[%c0_11] : memref<2xf32, #tpu.memory_space<smem>>
    %c1_12 = arith.constant 1 : index
    %11 = memref.load %arg3[%c1_12] : memref<2xf32, #tpu.memory_space<smem>>
    %12 = vector.broadcast %5 : f32 to vector<1x128xf32>
    %13 = arith.mulf %0, %12 : vector<1x128xf32>
    %14 = vector.broadcast %9 : f32 to vector<1x128xf32>
    %15 = arith.mulf %1, %14 : vector<1x128xf32>
    %16 = arith.addf %13, %15 : vector<1x128xf32>
    %cst_13 = arith.constant 0.000000e+00 : f32
    %17 = vector.broadcast %cst_13 : f32 to vector<1x128xf32>
    %18 = arith.subf %17, %16 : vector<1x128xf32>
    %19 = math.exp %18 : vector<1x128xf32>
    %cst_14 = arith.constant 1.000000e+00 : f32
    %20 = vector.broadcast %cst_14 : f32 to vector<1x128xf32>
    %21 = arith.addf %20, %19 : vector<1x128xf32>
    %cst_15 = arith.constant 1.000000e+00 : f32
    %22 = vector.broadcast %cst_15 : f32 to vector<1x128xf32>
    %23 = arith.divf %22, %21 : vector<1x128xf32>
    %cst_16 = arith.constant 1.000000e+00 : f32
    %24 = vector.broadcast %cst_16 : f32 to vector<1x128xf32>
    %25 = arith.subf %24, %23 : vector<1x128xf32>
    %c0_17 = arith.constant 0 : index
    %c0_18 = arith.constant 0 : index
    %26 = vector.load %arg5[%c0_17, %c0_18] : memref<2x128xf32, #tpu.memory_space<vmem>>, vector<1x128xf32>
    tpu.vector_store %arg5[%c0_17, %c0_18], %23 {strides = array<i32>} : memref<2x128xf32, #tpu.memory_space<vmem>>, vector<1x128xf32>,
    %c1_19 = arith.constant 1 : index
    %c0_20 = arith.constant 0 : index
    %27 = vector.load %arg5[%c1_19, %c0_20] : memref<2x128xf32, #tpu.memory_space<vmem>>, vector<1x128xf32>
    tpu.vector_store %arg5[%c1_19, %c0_20], %25 {strides = array<i32>} : memref<2x128xf32, #tpu.memory_space<vmem>>, vector<1x128xf32>,
    %28 = arith.subf %10, %11 : f32
    %29 = vector.broadcast %28 : f32 to vector<1x128xf32>
    %30 = arith.mulf %23, %29 : vector<1x128xf32>
    %31 = vector.broadcast %11 : f32 to vector<1x128xf32>
    %32 = arith.addf %31, %30 : vector<1x128xf32>
    %c0_21 = arith.constant 0 : index
    %c0_22 = arith.constant 0 : index
    %33 = vector.load %arg4[%c0_21, %c0_22] : memref<1x128xf32, #tpu.memory_space<vmem>>, vector<1x128xf32>
    tpu.vector_store %arg4[%c0_21, %c0_22], %32 {strides = array<i32>} : memref<1x128xf32, #tpu.memory_space<vmem>>, vector<1x128xf32>,
    return
  }
  func.func @transform_0(%arg0: i32) -> (i32, i32) {
    %c0_i32 = arith.constant 0 : i32
    %c0_i32_0 = arith.constant 0 : i32
    return %c0_i32, %arg0 : i32, i32
  }
  func.func @transform_1(%arg0: i32) -> (i32, i32) {
    %c0_i32 = arith.constant 0 : i32
    %c0_i32_0 = arith.constant 0 : i32
    %c0_i32_1 = arith.constant 0 : i32
    return %c0_i32, %c0_i32_0 : i32, i32
  }
  func.func @transform_2(%arg0: i32) -> i32 {
    %c0_i32 = arith.constant 0 : i32
    %c0_i32_0 = arith.constant 0 : i32
    return %c0_i32 : i32
  }
  func.func @transform_3(%arg0: i32) -> (i32, i32) {
    %c0_i32 = arith.constant 0 : i32
    %c0_i32_0 = arith.constant 0 : i32
    return %c0_i32, %arg0 : i32, i32
  }
  func.func @transform_4(%arg0: i32) -> (i32, i32) {
    %c0_i32 = arith.constant 0 : i32
    %c0_i32_0 = arith.constant 0 : i32
    return %c0_i32, %arg0 : i32, i32
  }
}

</mosaic_0001>

<bundles_post_ra>
// kernel: tpu_custom_call.1
= control target key start
LH: loop header
LB: loop body
LE: loop exit
PB: predicated region body
PF: predicated region fallthrough
CT: control target
= control target key end

     0   :  { %10 = vsyncpa [#allocation3], 0  ;;  %s303_s0 = inlined_call_operand.hbm [shape: f32[2,128], index: 0, kind: input, shape index: {}]   ;;  %s304_s1 = inlined_call_operand.vmem [shape: f32[2,2], index: 1, kind: input, shape index: {}]   ;;  %s305_s2 = inlined_call_operand.vmem [shape: f32[2], index: 2, kind: input, shape index: {}]   ;;  %s306_s3 = inlined_call_operand.hbm [shape: f32[1,128], index: 3, kind: output, shape index: {0}]   ;;  %s307_s4 = inlined_call_operand.hbm [shape: f32[2,128], index: 4, kind: output, shape index: {1}]  }
   0x1   :  { %11 = vsyncpa [#allocation5], 0 }
   0x2   :  { %12 = vsyncpa [#allocation8], 0 }
   0x3   :  { %13 = vsyncpa [#allocation4], 0 }
   0x4   :  { %14 = vsyncpa [#allocation11], 0  ;;  %s31_s17 = sshll.u32 %s304_s1, 4  ;;  %s231_s18 = smov [#allocation2]   ;;  %s32_s17 = int_to_ptr.vmem [resolvable:$true] %s31_s17 }
   0x5   :  { %s21_s19 = sshll.u32 %s231_s18, 4  ;;  %s131_s22 = scalar_lea.hbm %s303_s0, 32  ;;  %s22_s19 = int_to_ptr.vmem [resolvable:$true] %s21_s19 }
   0x6   :  { %p132_p0 = scmp.ne.s32.totalorder %s303_s0, %s131_s22  ;;  %p135_p1 = scmp.lt.u32.totalorder %s131_s22, %s303_s0 }
   0x8   :  { %p137_p2 = pnand %p135_p1, %p132_p0 }
   0xa   :  { %140 = shalt.err (!%p137_p2)
}
   0xb   :  { %s141_s27 = scalar_lea.vmem %s22_s19, 32  ;;  %p146_p4 = scmp.lt.s32.totalorder %s22_s19, %s22_s19 }
   0xc   :  { %p142_p3 = scmp.ne.s32.totalorder %s22_s19, %s141_s27  ;;  %p147_p5 = scmp.lt.s32.totalorder %s141_s27, %s141_s27 }
   0xe   :  { %p148_p6 = por %p147_p5, %p146_p4 }
  0x10   :  { %p149_p7 = pnand %p148_p6, %p142_p3 }
  0x12   :  { %152 = shalt.err (!%p149_p7)
}
  0x13   :  { %24 = dma.hbm_to_vmem [thread:$0]  %s303_s0, 32, %s22_s19, [#allocation3]  }
  0x14   :  { %s153_s29 = scalar_lea.vmem %s32_s17, 32  ;;  %p158_p9 = scmp.lt.s32.totalorder %s32_s17, %s32_s17 }
  0x15   :  { %p154_p8 = scmp.ne.s32.totalorder %s32_s17, %s153_s29  ;;  %p159_p10 = scmp.lt.s32.totalorder %s153_s29, %s153_s29 }
  0x17   :  { %p160_p11 = por %p159_p10, %p158_p9 }
  0x19   :  { %p161_p12 = pnand %p160_p11, %p154_p8 }
  0x1b   :  { %164 = shalt.err (!%p161_p12)
}
  0x1c   :  { %s232_s30 = smov [#allocation6]   ;;  %s41_s7 = sshll.u32 %s305_s2, 4  ;;  %s42_s7 = int_to_ptr.vmem [resolvable:$true] %s41_s7 }
  0x1d   :  { %34 = dma.vmem_to_smem %s32_s17, 32, %s232_s30, [#allocation5]  }
  0x1e   :  { %s165_s8 = scalar_lea.vmem %s42_s7, 16  ;;  %p170_p0 = scmp.lt.s32.totalorder %s42_s7, %s42_s7 }
  0x1f   :  { %p166_p13 = scmp.ne.s32.totalorder %s42_s7, %s165_s8  ;;  %p171_p1 = scmp.lt.s32.totalorder %s165_s8, %s165_s8 }
  0x21   :  { %p172_p2 = por %p171_p1, %p170_p0 }
  0x23   :  { %p173_p3 = pnand %p172_p2, %p166_p13 }
  0x25   :  { %176 = shalt.err (!%p173_p3)
}
  0x26   :  { %s233_s0 = smov [#allocation7]  }
  0x27   :  { %44 = dma.vmem_to_smem %s42_s7, 16, %s233_s0, [#allocation8]  }
  0x28   :  { %221 = dma.done.wait [#allocation3], 32  }
  0x29   :  { %222 = vsyncadd [#allocation3], 4294967264 }
  0x2a   :  { %223 = dma.done.wait [#allocation5], 32  }
  0x2b   :  { %224 = vsyncadd [#allocation5], 4294967264 }
  0x2c   :  { %225 = dma.done.wait [#allocation8], 16  }
  0x2d   :  { %226 = vsyncadd [#allocation8], 4294967280 }
  0x2e   :  { %54 = sfence }
  0x2f   :  { %s57_s9 = sld [smem:[#allocation6]]  ;;  %s118_s10 = sld [smem:[#allocation6 + $0x1]]  ;;  %v55_v0 = vld [vmem:[#allocation2] sm:$0x1]  ;;  %v56_v1 = vld [vmem:[#allocation2 + $0x1] sm:$0x1] }
  0x30   :  { %s119_s2 = sld [smem:[#allocation6 + $0x80]]  ;;  %s120_s11 = sld [smem:[#allocation6 + $0x81]] }
  0x31   :  { %s65_s16 = sld [smem:[#allocation7]]  ;;  %s121_s17 = sld [smem:[#allocation7 + $0x1]] }
  0x32   :  { %s234_s19 = smov [#allocation10]   ;;  %s235_s21 = smov [#allocation9]  }
  0x33   :  { %s103_s20 = sshll.u32 %s234_s19, 4  ;;  %s93_s22 = sshll.u32 %s235_s21, 4  ;;  %s104_s20 = int_to_ptr.vmem [resolvable:$true] %s103_s20  ;;  %s94_s22 = int_to_ptr.vmem [resolvable:$true] %s93_s22 }
  0x34   :  { %s177_s23 = scalar_lea.vmem %s104_s20, 32  ;;  %p182_p5 = scmp.lt.s32.totalorder %s104_s20, %s104_s20 }
  0x35   :  { %s59_s12 = ssub.f32 %s57_s9, %s118_s10  ;;  %p178_p4 = scmp.ne.s32.totalorder %s104_s20, %s177_s23 }
  0x36   :  { %s63_s13 = ssub.f32 %s119_s2, %s120_s11  ;;  %p183_p6 = scmp.lt.s32.totalorder %s177_s23, %s177_s23 }
  0x37   :  { %s60_s14 = smul.f32 0.70710677, %s59_s12  ;;  %s81_s18 = ssub.f32 %s65_s16, %s121_s17  ;;  %v84_v13 = vstv %s121_s17 }
  0x38   :  { %s64_s15 = smul.f32 0.70710677, %s63_s13  ;;  %p184_p7 = por %p183_p6, %p182_p5 }
  0x39   :  { %v67_v2 = vstv %s60_s14  ;;  %v82_v11 = vstv %s81_s18 }
  0x3a   :  { %v68_v3 = vmul.f32 %v67_v2, %v55_v0  ;;  %v69_v4 = vstv %s64_s15  ;;  %p185_p8 = pnand %p184_p7, %p178_p4 }
  0x3b   :  { %v70_v5 = vmul.f32 %v69_v4, %v56_v1 }
  0x3d   :  { %v71_v6 = vadd.f32 %v70_v5, %v68_v3 }
  0x3f   :  { %v72_v7 = vsub.f32 0.0, %v71_v6 }
  0x41   :  { %v73_v8 = vmul.f32 1.442695, %v72_v7 }
  0x43   :  { %127 = vpow2.f32 %v73_v8 }
  0x4d   :  { %v128_v9 = vpop.eup %127 }
  0x4e   :  { %v75_v10 = vadd.f32 1.0, %v128_v9 }
  0x50   :  { %129 = vrcp.f32 %v75_v10 }
  0x5a   :  { %v130_v12 = vpop.eup %129 }
  0x5b   :  { %79 = vst [vmem:[#allocation10] sm:$0x1] %v130_v12  ;;  %v78_v14 = vsub.f32 1.0, %v130_v12  ;;  %v83_v15 = vmul.f32 %v130_v12, %v82_v11 }
  0x5d   :  { %80 = vst [vmem:[#allocation10 + $0x1] sm:$0x1] %v78_v14  ;;  %v85_v16 = vadd.f32 %v84_v13, %v83_v15 }
  0x5e   :  { %188 = shalt.err (!%p185_p8)
}
  0x5f   :  { %s189_s26 = scalar_lea.hbm %s307_s4, 32 }
  0x60   :  { %p190_p9 = scmp.ne.s32.totalorder %s307_s4, %s189_s26  ;;  %p193_p10 = scmp.lt.u32.totalorder %s189_s26, %s307_s4 }
  0x62   :  { %p195_p11 = pnand %p193_p10, %p190_p9 }
  0x64   :  { %198 = shalt.err (!%p195_p11)
}
  0x65   :  { %106 = dma.vmem_to_hbm [thread:$0]  %s104_s20, 32, %s307_s4, [#allocation11]   ;;  %86 = vst [vmem:[#allocation9] sm:$0x1] %v85_v16 }
  0x66   :  { %s199_s6 = scalar_lea.vmem %s94_s22, 16  ;;  %s203_s7 = scalar_lea.vmem %s94_s22, 32 }
  0x67   :  { %p200_p12 = scmp.ne.s32.totalorder %s94_s22, %s199_s6  ;;  %p204_p13 = scmp.lt.s32.totalorder %s94_s22, %s94_s22 }
  0x68   :  { %p205_p0 = scmp.lt.s32.totalorder %s203_s7, %s199_s6 }
  0x6a   :  { %p206_p1 = por %p205_p0, %p204_p13 }
  0x6c   :  { %p207_p2 = pnand %p206_p1, %p200_p12 }
  0x6e   :  { %210 = shalt.err (!%p207_p2)
}
  0x6f   :  { %s211_s9 = scalar_lea.hbm %s306_s3, 16 }
  0x70   :  { %p212_p3 = scmp.ne.s32.totalorder %s306_s3, %s211_s9  ;;  %p215_p4 = scmp.lt.u32.totalorder %s211_s9, %s306_s3 }
  0x72   :  { %p217_p5 = pnand %p215_p4, %p212_p3 }
  0x74   :  { %220 = shalt.err (!%p217_p5)
}
  0x75   :  { %96 = dma.vmem_to_hbm [thread:$0]  %s94_s22, 16, %s306_s3, [#allocation4]  }
  0x76   :  { %227 = dma.done.wait [#allocation4], 16  }
  0x77   :  { %228 = vsyncadd [#allocation4], 4294967280 }
  0x78   :  { %229 = dma.done.wait [#allocation11], 32  }
  0x79   :  { %230 = vsyncadd [#allocation11], 4294967264 }
  0x7a   :  { %113 = vsyncpa [#allocation3], 1 }
  0x7b   :  { %114 = vsyncpa [#allocation4], 1 }
  0x7c   :  { %115 = vsyncpa [#allocation11], 1 }
  0x7d   :  { %116 = vsyncpa [#allocation5], 1 }
  0x7e   :  { %117 = vsyncpa [#allocation8], 1 }

</bundles_post_ra>
